<compile_context>
chip_gen: v7x
topology: tpu7x:2x2x1
jax: 0.10.0
libtpu: 0.0.40
codegen_flags: <defaults>
</compile_context>

<pallas_src>
import functools

import jax
import jax.numpy as jnp
from jax.experimental import pallas as pl
from jax.experimental.pallas import tpu as pltpu

HEADS = 2
NEG_SLOPE = 0.2       # GATConv default negative_slope
_NEG = -1e30          # "minus infinity" for masked logits (kept finite on purpose)
LANE = 128
SUBLANE = 8
HEAD_ALIGN = 64       # per-head slab width alignment (heads * 64 = 128 lanes)


def _round_up(x, m):
    return ((x + m - 1) // m) * m


def _pick_tile(n, candidates, max_val=None):
    for c in candidates:
        if n % c == 0 and (max_val is None or c <= max_val):
            return c
    return n


# --------------------------------------------------------------------------
# Stage 1: per-node projection + attention logits
#   z     = x @ W_pad     (TM, H*Cpad)  stored bf16 (per-head lane-dense slabs)
#   alpha = z @ att_mat   (TM, 128) f32; cols [0:H)=a_src, [H:2H)=a_dst
# --------------------------------------------------------------------------
def _gat_project_kernel(x_ref, w_ref, att_ref, z_ref, alpha_ref):
    z = jnp.dot(x_ref[...], w_ref[...], preferred_element_type=jnp.float32)
    z_ref[...] = z.astype(z_ref.dtype)
    alpha_ref[...] = jnp.dot(z, att_ref[...], preferred_element_type=jnp.float32)


# --------------------------------------------------------------------------
# Stage 2: masked edge softmax + neighbor aggregation (flash-style online softmax)
# grid = (row_tiles [parallel], src_tiles [arbitrary, reduction last]).
# Scalar-prefetched nonzero-count table gates empty tiles.
# --------------------------------------------------------------------------
def _gat_attention_kernel(cnt_ref, mask_ref, z_ref, asrc_ref, adst_ref, bias_ref,
                          o_ref, m_scr, l_scr, acc_scr, *, heads, c_pad):
    i = pl.program_id(0)
    k = pl.program_id(1)

    @pl.when(k == 0)
    def _init():
        m_scr[...] = jnp.full_like(m_scr, _NEG)
        l_scr[...] = jnp.zeros_like(l_scr)
        acc_scr[...] = jnp.zeros_like(acc_scr)

    @pl.when(cnt_ref[i, k] > 0)           # skip compute on fully-empty mask tiles
    def _body():
        valid = mask_ref[...] != 0        # (TM, TK) bool, int8 mask

        for h in range(heads):            # static unroll, heads=2
            a_d = adst_ref[:, h:h + 1]    # (TM, 1)  target logits
            a_s = asrc_ref[h:h + 1, :]    # (1, TK)  source logits
            e = a_d + a_s                 # (TM, TK)
            e = jnp.maximum(e, NEG_SLOPE * e)     # LeakyReLU(0.2), no select
            e = jnp.where(valid, e, _NEG)

            m_prev = m_scr[h]                                 # (TM, 1)
            m_new = jnp.maximum(m_prev, jnp.max(e, axis=-1, keepdims=True))
            corr = jnp.exp(m_prev - m_new)
            # masked entries: exp(_NEG - m_new) underflows to exactly 0 in f32;
            # transient all-masked rows are wiped by corr once a real edge appears
            # (guaranteed by self loops for every real node).
            p = jnp.exp(e - m_new)                            # (TM, TK) f32

            l_scr[h] = corr * l_scr[h] + jnp.sum(p, axis=-1, keepdims=True)
            acc_scr[h] = corr * acc_scr[h] + jnp.dot(
                p.astype(jnp.bfloat16),
                z_ref[:, h * c_pad:(h + 1) * c_pad],
                preferred_element_type=jnp.float32)
            m_scr[h] = m_new

    @pl.when(k == pl.num_programs(1) - 1)
    def _finalize():
        total = None
        for h in range(heads):
            inv = pl.reciprocal(l_scr[h], approx=True)    # EUP, effectively free
            term = acc_scr[h] * inv
            total = term if total is None else total + term
        o_ref[...] = total * (1.0 / heads) + bias_ref[...]


# --------------------------------------------------------------------------
# Wrappers (padding / parameter repacking is plain-JAX glue)
# --------------------------------------------------------------------------
def _build_att_mat(att_src, att_dst, c, c_pad, heads):
    """(H*Cpad, 128) matrix: col h -> att_src[h], col heads+h -> att_dst[h]."""
    m = jnp.zeros((heads * c_pad, LANE), jnp.float32)
    for h in range(heads):
        m = m.at[h * c_pad:h * c_pad + c, h].set(att_src[h])
        m = m.at[h * c_pad:h * c_pad + c, heads + h].set(att_dst[h])
    return m


def gat_conv(x, mask_p, w, att_src, att_dst, bias, *, out_channels, heads=HEADS):
    n, c_in = x.shape
    n_pad = mask_p.shape[0]
    # Per-head slab width: 64 lanes for out_channels<=64 so both heads fill one
    # lane-dense 128-wide z slab (halves the re-streamed z vs 128-per-head).
    c_pad = _round_up(out_channels, HEAD_ALIGN)
    c_in_p = _round_up(c_in, SUBLANE)

    # Row tile capped at n_pad/2 so the parallel axis has >=2 tiles (v7x: 2 TCs).
    tm = _pick_tile(n_pad, (512, 256, 128, 64), max_val=n_pad // 2)
    tk = _pick_tile(n_pad, (2048, 1024, 512, 256, 128))   # reduction (source) tile
    tmp = _pick_tile(n_pad, (1024, 512, 256, 128))        # stage-1 row tile

    # pad inputs / repack weights so each head occupies a lane-dense slab
    x_p = jnp.zeros((n_pad, c_in_p), jnp.float32).at[:n, :c_in].set(x)
    w_p = jnp.zeros((c_in_p, heads * c_pad), jnp.float32)
    for h in range(heads):
        w_p = w_p.at[:c_in, h * c_pad:h * c_pad + out_channels].set(
            w[:, h * out_channels:(h + 1) * out_channels])
    att_mat = _build_att_mat(att_src, att_dst, out_channels, c_pad, heads)
    bias_p = jnp.zeros((1, c_pad), jnp.float32).at[0, :out_channels].set(bias)

    # ---- stage 1: projection + logits -------------------------------------
    z, alpha = pl.pallas_call(
        _gat_project_kernel,
        out_shape=(
            jax.ShapeDtypeStruct((n_pad, heads * c_pad), jnp.bfloat16),  # bf16 z
            jax.ShapeDtypeStruct((n_pad, LANE), jnp.float32),
        ),
        grid=(n_pad // tmp,),
        in_specs=[
            pl.BlockSpec((tmp, c_in_p), lambda i: (i, 0)),
            pl.BlockSpec((c_in_p, heads * c_pad), lambda i: (0, 0)),
            pl.BlockSpec((heads * c_pad, LANE), lambda i: (0, 0)),
        ],
        out_specs=(
            pl.BlockSpec((tmp, heads * c_pad), lambda i: (i, 0)),
            pl.BlockSpec((tmp, LANE), lambda i: (i, 0)),
        ),
        compiler_params=pltpu.CompilerParams(
            dimension_semantics=("parallel",)),
    )(x_p, w_p, att_mat)

    a_src_t = alpha[:, :heads].T               # (heads, n_pad) — keyed by source tile
    a_dst = alpha[:, heads:2 * heads]          # (n_pad, heads) — keyed by target tile

    # per-(row_tile, src_tile) nonzero counts -> SMEM scalar prefetch (block skipping)
    n_rt, n_st = n_pad // tm, n_pad // tk
    cnt = mask_p.astype(jnp.int32).reshape(n_rt, tm, n_st, tk).sum(axis=(1, 3))

    # ---- stage 2: masked softmax + aggregation -----------------------------
    kernel = functools.partial(_gat_attention_kernel, heads=heads, c_pad=c_pad)
    out_p = pl.pallas_call(
        kernel,
        out_shape=jax.ShapeDtypeStruct((n_pad, c_pad), jnp.float32),
        grid_spec=pltpu.PrefetchScalarGridSpec(
            num_scalar_prefetch=1,
            grid=(n_rt, n_st),
            in_specs=[
                pl.BlockSpec((tm, tk), lambda i, k, cnt: (i, k)),              # int8 mask
                pl.BlockSpec((tk, heads * c_pad), lambda i, k, cnt: (k, 0)),   # bf16 z
                pl.BlockSpec((heads, tk), lambda i, k, cnt: (0, k)),           # a_src
                pl.BlockSpec((tm, heads), lambda i, k, cnt: (i, 0)),           # a_dst
                pl.BlockSpec((1, c_pad), lambda i, k, cnt: (0, 0)),            # bias
            ],
            out_specs=pl.BlockSpec((tm, c_pad), lambda i, k, cnt: (i, 0)),
            scratch_shapes=[
                pltpu.VMEM((heads, tm, 1), jnp.float32),      # running max
                pltpu.VMEM((heads, tm, 1), jnp.float32),      # running denom
                pltpu.VMEM((heads, tm, c_pad), jnp.float32),  # running numerator
            ]),
        compiler_params=pltpu.CompilerParams(
            dimension_semantics=("parallel", "arbitrary")),
    )(cnt, mask_p, z, a_src_t, a_dst, bias_p)

    return out_p[:n, :out_channels]


def dense_edge_mask(edge_index, num_nodes, n_pad):
    """int8 mask[dst, src] = 1 for edges src->dst, plus self loops (GAT default)."""
    src, dst = edge_index[0], edge_index[1]
    m = jnp.zeros((n_pad, n_pad), jnp.int8)
    m = m.at[dst, src].set(1)
    idx = jnp.arange(num_nodes)
    m = m.at[idx, idx].set(1)
    return m


def gat_encoder(params, x, edge_index, num_nodes):
    out_channels = params["bias1"].shape[0]
    n_pad = _round_up(num_nodes, LANE)
    mask_p = dense_edge_mask(edge_index, num_nodes, n_pad)   # built once, reused
    h = gat_conv(x, mask_p, params["w1"], params["att_src1"], params["att_dst1"],
                 params["bias1"], out_channels=out_channels)
    h = gat_conv(h, mask_p, params["w2"], params["att_src2"], params["att_dst2"],
                 params["bias2"], out_channels=out_channels)
    return h


# --------------------------------------------------------------------------
# Pure-JAX reference (dense GATConv semantics, full f32) for a correctness check
# --------------------------------------------------------------------------
def _gat_layer_ref(x, mask, w, att_src, att_dst, bias, heads=HEADS):
    n = x.shape[0]
    c = att_src.shape[1]
    z = (x @ w).reshape(n, heads, c)
    a_src = jnp.einsum("nhc,hc->nh", z, att_src)
    a_dst = jnp.einsum("nhc,hc->nh", z, att_dst)
    e = a_dst[:, None, :] + a_src[None, :, :]            # (dst, src, head)
    e = jnp.where(e >= 0.0, e, NEG_SLOPE * e)
    e = jnp.where(mask[:, :, None] > 0, e, -jnp.inf)
    alpha = jax.nn.softmax(e, axis=1)
    out = jnp.einsum("ijh,jhc->ihc", alpha, z)
    return out.mean(axis=1) + bias


def _gat_encoder_ref(params, x, edge_index, num_nodes):
    mask = dense_edge_mask(edge_index, num_nodes, num_nodes)
    h = _gat_layer_ref(x, mask, params["w1"], params["att_src1"],
                       params["att_dst1"], params["bias1"])
    return _gat_layer_ref(h, mask, params["w2"], params["att_src2"],
                          params["att_dst2"], params["bias2"])


# --------------------------------------------------------------------------
# Parameter init (mirrors PyG GATConv parameter shapes)
# --------------------------------------------------------------------------
def _glorot(key, shape):
    fan_in, fan_out = shape[-2], shape[-1]
    limit = jnp.sqrt(6.0 / (fan_in + fan_out))
    return jax.random.uniform(key, shape, jnp.float32, -limit, limit)


def init_params(key, in_channels, out_channels, heads=HEADS):
    ks = jax.random.split(key, 8)
    return {
        # layer 1: in_channels -> out_channels, heads=2, concat=False
        "w1": _glorot(ks[0], (in_channels, heads * out_channels)),
        "att_src1": _glorot(ks[1], (heads, out_channels)),
        "att_dst1": _glorot(ks[2], (heads, out_channels)),
        "bias1": 0.1 * jax.random.normal(ks[3], (out_channels,), jnp.float32),
        # layer 2: out_channels -> out_channels
        "w2": _glorot(ks[4], (out_channels, heads * out_channels)),
        "att_src2": _glorot(ks[5], (heads, out_channels)),
        "att_dst2": _glorot(ks[6], (heads, out_channels)),
        "bias2": 0.1 * jax.random.normal(ks[7], (out_channels,), jnp.float32),
    }


if __name__ == "__main__":
    key = jax.random.PRNGKey(0)
    k_x, k_e1, k_e2, k_p = jax.random.split(key, 4)

    num_nodes = 64
    in_channels = 16
    out_channels = 32
    num_edges = 256

    x = jax.random.normal(k_x, (num_nodes, in_channels), jnp.float32)
    src = jax.random.randint(k_e1, (num_edges,), 0, num_nodes, jnp.int32)
    dst = jax.random.randint(k_e2, (num_edges,), 0, num_nodes, jnp.int32)
    edge_index = jnp.stack([src, dst], axis=0)   # (2, E)

    params = init_params(k_p, in_channels, out_channels)

    out = gat_encoder(params, x, edge_index, num_nodes)
    out = jax.block_until_ready(out)

    ref = _gat_encoder_ref(params, x, edge_index, num_nodes)
    assert out.shape == (num_nodes, out_channels)
    err = float(jnp.max(jnp.abs(out - ref)))
    # bf16 z / bf16 p in the aggregation matmul loosens the tolerance vs full-f32 ref.
    assert jnp.allclose(out, ref, atol=5e-2, rtol=5e-2), err

    print("KERNEL_OK")
</pallas_src>

<mosaic_0001>
module attributes {stable_mosaic.version = 11 : i64} {
  func.func @_gat_project_kernel(%arg0: i32, %arg1: memref<128x16xf32, #tpu.memory_space<vmem>>, %arg2: memref<16x128xf32, #tpu.memory_space<vmem>>, %arg3: memref<128x128xf32, #tpu.memory_space<vmem>>, %arg4: memref<128x128xbf16, #tpu.memory_space<vmem>>, %arg5: memref<128x128xf32, #tpu.memory_space<vmem>>) attributes {dimension_semantics = [#tpu.dimension_semantics<parallel>], iteration_bounds = array<i64: 1>, scalar_prefetch = 0 : i64, scratch_operands = 0 : i64, tpu.core_type = #tpu.core_type<tc>, window_params = [{transform_indices = @transform_0, window_bounds = array<i64: 128, 16>}, {pipeline_mode = #tpu.pipeline_mode<synchronous>, transform_indices = @transform_1, window_bounds = array<i64: 16, 128>}, {pipeline_mode = #tpu.pipeline_mode<synchronous>, transform_indices = @transform_2, window_bounds = array<i64: 128, 128>}, {transform_indices = @transform_3, window_bounds = array<i64: 128, 128>}, {transform_indices = @transform_4, window_bounds = array<i64: 128, 128>}]} {
    %c0 = arith.constant 0 : index
    %c0_0 = arith.constant 0 : index
    %0 = vector.load %arg1[%c0, %c0_0] : memref<128x16xf32, #tpu.memory_space<vmem>>, vector<128x16xf32>
    %c0_1 = arith.constant 0 : index
    %c0_2 = arith.constant 0 : index
    %1 = vector.load %arg2[%c0_1, %c0_2] : memref<16x128xf32, #tpu.memory_space<vmem>>, vector<16x128xf32>
    %cst = arith.constant dense<0.000000e+00> : vector<128x128xf32>
    %2 = tpu.matmul %0, %1, %cst {dimension_numbers = #tpu.dot_dimension_numbers<[1], [0], [0], [1], [0, 0, 1, 1], [], []>} : vector<128x16xf32>, vector<16x128xf32>, vector<128x128xf32> -> vector<128x128xf32>
    %3 = arith.truncf %2 : vector<128x128xf32> to vector<128x128xbf16>
    %c0_3 = arith.constant 0 : index
    %c0_4 = arith.constant 0 : index
    %4 = vector.load %arg4[%c0_3, %c0_4] : memref<128x128xbf16, #tpu.memory_space<vmem>>, vector<128x128xbf16>
    tpu.vector_store %arg4[%c0_3, %c0_4], %3 {strides = array<i32>} : memref<128x128xbf16, #tpu.memory_space<vmem>>, vector<128x128xbf16>,
    %c0_5 = arith.constant 0 : index
    %c0_6 = arith.constant 0 : index
    %5 = vector.load %arg3[%c0_5, %c0_6] : memref<128x128xf32, #tpu.memory_space<vmem>>, vector<128x128xf32>
    %cst_7 = arith.constant dense<0.000000e+00> : vector<128x128xf32>
    %6 = tpu.matmul %2, %5, %cst_7 {dimension_numbers = #tpu.dot_dimension_numbers<[1], [0], [0], [1], [0, 0, 1, 1], [], []>} : vector<128x128xf32>, vector<128x128xf32>, vector<128x128xf32> -> vector<128x128xf32>
    %c0_8 = arith.constant 0 : index
    %c0_9 = arith.constant 0 : index
    %7 = vector.load %arg5[%c0_8, %c0_9] : memref<128x128xf32, #tpu.memory_space<vmem>>, vector<128x128xf32>
    tpu.vector_store %arg5[%c0_8, %c0_9], %6 {strides = array<i32>} : memref<128x128xf32, #tpu.memory_space<vmem>>, vector<128x128xf32>,
    return
  }
  func.func @transform_0(%arg0: i32) -> (i32, i32) {
    %c0_i32 = arith.constant 0 : i32
    %c0_i32_0 = arith.constant 0 : i32
    return %arg0, %c0_i32 : i32, i32
  }
  func.func @transform_1(%arg0: i32) -> (i32, i32) {
    %c0_i32 = arith.constant 0 : i32
    %c0_i32_0 = arith.constant 0 : i32
    %c0_i32_1 = arith.constant 0 : i32
    return %c0_i32, %c0_i32_0 : i32, i32
  }
  func.func @transform_2(%arg0: i32) -> (i32, i32) {
    %c0_i32 = arith.constant 0 : i32
    %c0_i32_0 = arith.constant 0 : i32
    %c0_i32_1 = arith.constant 0 : i32
    return %c0_i32, %c0_i32_0 : i32, i32
  }
  func.func @transform_3(%arg0: i32) -> (i32, i32) {
    %c0_i32 = arith.constant 0 : i32
    %c0_i32_0 = arith.constant 0 : i32
    return %arg0, %c0_i32 : i32, i32
  }
  func.func @transform_4(%arg0: i32) -> (i32, i32) {
    %c0_i32 = arith.constant 0 : i32
    %c0_i32_0 = arith.constant 0 : i32
    return %arg0, %c0_i32 : i32, i32
  }
}

</mosaic_0001>

<bundles_post_ra>
// kernel: tpu_custom_call.1
= control target key start
LH: loop header
LB: loop body
LE: loop exit
PB: predicated region body
PF: predicated region fallthrough
CT: control target
= control target key end

     0   :  { %10 = vsyncpa [#allocation3], 0  ;;  %vm36_vm0 = vcmask 130048   ;;  %s1027_s0 = inlined_call_operand.vmem [shape: f32[128,16], index: 0, kind: input, shape index: {}]   ;;  %s1028_s1 = inlined_call_operand.vmem [shape: f32[16,128], index: 1, kind: input, shape index: {}]   ;;  %s1029_s2 = inlined_call_operand.vmem [shape: f32[128,128], index: 2, kind: input, shape index: {}]   ;;  %s1030_s3 = inlined_call_operand.hbm [shape: bf16[128,128], index: 3, kind: output, shape index: {0}]   ;;  %s1031_s4 = inlined_call_operand.hbm [shape: f32[128,128], index: 4, kind: output, shape index: {1}]  }
   0x1   :  { %v34_v0 = vld [vmem:[%s1028_s1] sm:$0xff]  ;;  %v35_v1 = vld [vmem:[%s1028_s1 + $0x8] sm:$0xff]  ;;  %v20_v5 = vld [vmem:[%s1027_s0 + $0x10] sm:$0xff] }
   0x2   :  { %v18_v2 = vld [vmem:[%s1027_s0] sm:$0xff]  ;;  %v748_v3 = vpack.c.bf16 %v35_v1, %v34_v0  ;;  %v19_v4 = vld [vmem:[%s1027_s0 + $0x8] sm:$0xff]  ;;  %v312_v8 = vld [vmem:[%s1029_s2 + $0x10] sm:$0xff] }
   0x3   :  { %668 = vmatprep.mubr.msk.f32.mxu0 %vm36_vm0, %v18_v2  ;;  %v310_v6 = vld [vmem:[%s1029_s2] sm:$0xff]  ;;  %v311_v7 = vld [vmem:[%s1029_s2 + $0x8] sm:$0xff]  ;;  %v313_v10 = vld [vmem:[%s1029_s2 + $0x18] sm:$0xff] }
   0x4   :  { %749 = vmatprep.subr.bf16.mxu0 %v748_v3  ;;  %v752_v9 = vpack.c.bf16 %v311_v7, %v310_v6  ;;  %v21_v11 = vld [vmem:[%s1027_s0 + $0x18] sm:$0xff]  ;;  %v756_v12 = vpack.c.bf16 %v313_v10, %v312_v8  ;;  %v314_v13 = vld [vmem:[%s1029_s2 + $0x20] sm:$0xff]  ;;  %v315_v14 = vld [vmem:[%s1029_s2 + $0x28] sm:$0xff] }
   0x5   :  { %751 = vmatpush3.bf16.msra.mxu0 %v748_v3  ;;  %v22_v15 = vld [vmem:[%s1027_s0 + $0x20] sm:$0xff]  ;;  %v760_v16 = vpack.c.bf16 %v315_v14, %v314_v13 }
   0x6   :  { %753 = vmatprep.subr.bf16.mxu0 %v752_v9  ;;  %784 = vmatprep.subr.bf16.mxu1 %v752_v9 }
   0x7   :  { %792 = vmatpush3.bf16.msra.mxu1 %v752_v9 }
   0x8   :  { %669 = vmatmul.mubr.msk.f32.vlgmr.msra.gmra.mrb[0].mxu0 %vm36_vm0, %v19_v4 }
   0x9   :  { %671 = vmatprep.mubr.msk.f32.mxu0 %vm36_vm0, %v20_v5  ;;  %755 = vmatpush3.bf16.msra.mxu0 %v752_v9 }
   0xa   :  { %757 = vmatprep.subr.bf16.mxu0 %v756_v12 }
   0xc   :  { %672 = vmatmul.mubr.msk.f32.gmra.mrb[2].mxu0 %vm36_vm0, %v21_v11 }
   0xd   :  { %11 = vsyncpa [#allocation5], 0  ;;  %674 = vmatprep.mubr.msk.f32.mxu0 %vm36_vm0, %v22_v15  ;;  %v23_v17 = vld [vmem:[%s1027_s0 + $0x28] sm:$0xff]  ;;  %v316_v18 = vld [vmem:[%s1029_s2 + $0x30] sm:$0xff]  ;;  %785 = vmatprep.subr.bf16.mxu1 %v756_v12 }
   0xe   :  { %v317_v19 = vld [vmem:[%s1029_s2 + $0x38] sm:$0xff]  ;;  %v24_v20 = vld [vmem:[%s1027_s0 + $0x30] sm:$0xff]  ;;  %759 = vmatpush3.bf16.msra.mxu0 %v756_v12  ;;  %793 = vmatpush3.bf16.msra.mxu1 %v756_v12  ;;  %v318_v23 = vld [vmem:[%s1029_s2 + $0x40] sm:$0xff] }
   0xf   :  { %761 = vmatprep.subr.bf16.mxu0 %v760_v16  ;;  %v764_v21 = vpack.c.bf16 %v317_v19, %v316_v18  ;;  %v25_v22 = vld [vmem:[%s1027_s0 + $0x38] sm:$0xff]  ;;  %v319_v24 = vld [vmem:[%s1029_s2 + $0x48] sm:$0xff]  ;;  %786 = vmatprep.subr.bf16.mxu1 %v760_v16  ;;  %v26_v25 = vld [vmem:[%s1027_s0 + $0x40] sm:$0xff] }
  0x10   :  { %675 = vmatmul.mubr.msk.f32.gmra.mrb[4].mxu0 %vm36_vm0, %v23_v17  ;;  %v768_v26 = vpack.c.bf16 %v319_v24, %v318_v23  ;;  %v27_v27 = vld [vmem:[%s1027_s0 + $0x48] sm:$0xff]  ;;  %v320_v28 = vld [vmem:[%s1029_s2 + $0x50] sm:$0xff]  ;;  %v321_v29 = vld [vmem:[%s1029_s2 + $0x58] sm:$0xff] }
  0x11   :  { %677 = vmatprep.mubr.msk.f32.mxu0 %vm36_vm0, %v24_v20  ;;  %v28_v30 = vld [vmem:[%s1027_s0 + $0x50] sm:$0xff]  ;;  %v772_v31 = vpack.c.bf16 %v321_v29, %v320_v28  ;;  %v29_v32 = vld [vmem:[%s1027_s0 + $0x58] sm:$0xff]  ;;  %v322_v33 = vld [vmem:[%s1029_s2 + $0x60] sm:$0xff] }
  0x12   :  { %763 = vmatpush3.bf16.msra.mxu0 %v760_v16  ;;  %794 = vmatpush3.bf16.msra.mxu1 %v760_v16  ;;  %v323_v34 = vld [vmem:[%s1029_s2 + $0x68] sm:$0xff]  ;;  %v30_v35 = vld [vmem:[%s1027_s0 + $0x60] sm:$0xff]  ;;  %v324_v38 = vld [vmem:[%s1029_s2 + $0x70] sm:$0xff] }
  0x13   :  { %765 = vmatprep.subr.bf16.mxu0 %v764_v21  ;;  %787 = vmatprep.subr.bf16.mxu1 %v764_v21  ;;  %v776_v36 = vpack.c.bf16 %v323_v34, %v322_v33  ;;  %v31_v37 = vld [vmem:[%s1027_s0 + $0x68] sm:$0xff]  ;;  %v325_v39 = vld [vmem:[%s1029_s2 + $0x78] sm:$0xff]  ;;  %v32_v40 = vld [vmem:[%s1027_s0 + $0x70] sm:$0xff] }
  0x14   :  { %678 = vmatmul.mubr.msk.f32.gmra.mrb[6].mxu0 %vm36_vm0, %v25_v22  ;;  %v780_v41 = vpack.c.bf16 %v325_v39, %v324_v38  ;;  %v33_v42 = vld [vmem:[%s1027_s0 + $0x78] sm:$0xff]  ;;  %s854_s0 = smov [#allocation2]  }
  0x15   :  { %680 = vmatprep.mubr.msk.f32.mxu0 %vm36_vm0, %v26_v25  ;;  %s492_s2 = sshll.u32 %s854_s0, 4  ;;  %s493_s2 = int_to_ptr.vmem [resolvable:$true] %s492_s2 }
  0x16   :  { %767 = vmatpush3.bf16.msra.mxu0 %v764_v21  ;;  %795 = vmatpush3.bf16.msra.mxu1 %v764_v21  ;;  %s806_s28 = scalar_lea.vmem %s493_s2, 1024  ;;  %p811_p1 = scmp.lt.s32.totalorder %s493_s2, %s493_s2 }
  0x17   :  { %769 = vmatprep.subr.bf16.mxu0 %v768_v26  ;;  %788 = vmatprep.subr.bf16.mxu1 %v768_v26  ;;  %p807_p0 = scmp.ne.s32.totalorder %s493_s2, %s806_s28  ;;  %p812_p2 = scmp.lt.s32.totalorder %s806_s28, %s806_s28 }
  0x18   :  { %681 = vmatmul.mubr.msk.f32.gmra.mrb[8].mxu0 %vm36_vm0, %v27_v27 }
  0x19   :  { %683 = vmatprep.mubr.msk.f32.mxu0 %vm36_vm0, %v28_v30  ;;  %p813_p3 = por %p812_p2, %p811_p1 }
  0x1a   :  { %771 = vmatpush3.bf16.msra.mxu0 %v768_v26  ;;  %796 = vmatpush3.bf16.msra.mxu1 %v768_v26 }
  0x1b   :  { %773 = vmatprep.subr.bf16.mxu0 %v772_v31  ;;  %789 = vmatprep.subr.bf16.mxu1 %v772_v31  ;;  %p814_p4 = pnand %p813_p3, %p807_p0 }
  0x1c   :  { %684 = vmatmul.mubr.msk.f32.gmra.mrb[10].mxu0 %vm36_vm0, %v29_v32 }
  0x1d   :  { %686 = vmatprep.mubr.msk.f32.mxu0 %vm36_vm0, %v30_v35 }
  0x1e   :  { %775 = vmatpush3.bf16.msra.mxu0 %v772_v31  ;;  %797 = vmatpush3.bf16.msra.mxu1 %v772_v31 }
  0x1f   :  { %777 = vmatprep.subr.bf16.mxu0 %v776_v36  ;;  %790 = vmatprep.subr.bf16.mxu1 %v776_v36 }
  0x20   :  { %687 = vmatmul.mubr.msk.f32.gmra.mrb[12].mxu0 %vm36_vm0, %v31_v37 }
  0x21   :  { %689 = vmatprep.mubr.msk.f32.mxu0 %vm36_vm0, %v32_v40 }
  0x22   :  { %779 = vmatpush3.bf16.msra.mxu0 %v776_v36  ;;  %798 = vmatpush3.bf16.msra.mxu1 %v776_v36 }
  0x23   :  { %781 = vmatprep.subr.bf16.mxu0 %v780_v41  ;;  %791 = vmatprep.subr.bf16.mxu1 %v780_v41 }
  0x24   :  { %690 = vmatmul.mubr.msk.f32.gmra.mrb[14].mxu0 %vm36_vm0, %v33_v42 }
  0x26   :  { %783 = vmatpush3.bf16.msra.mxu0 %v780_v41  ;;  %799 = vmatpush3.bf16.msra.mxu1 %v780_v41 }
  0xdb   :  { %v670_v43 = vpop.f32.mrb[0].mxu0 }
  0xdc   :  { %v151_v44 = vpop.f32.mrb[1].mxu0 }
  0xdd   :  { %v570_v45 = vpack.c.bf16 %v670_v43, %v151_v44  ;;  %724 = vmatprep.mubr.f32.mxu0 %v151_v44 }
  0xde   :  { %725 = vmatmul.mubr.f32.vlgmr.msra.gmra.mrb[16].mxu0 %v670_v43 }
  0xdf   :  { %571 = vst [vmem:[#allocation2] sm:$0xff] %v570_v45   ;;  %v673_v46 = vpop.f32.mrb[2].mxu0 }
  0xe0   :  { %v161_v47 = vpop.f32.mrb[3].mxu0 }
  0xe1   :  { %v575_v48 = vpack.c.bf16 %v673_v46, %v161_v47  ;;  %727 = vmatprep.mubr.f32.mxu0 %v161_v47 }
  0xe2   :  { %728 = vmatmul.mubr.f32.gmra.mrb[18].mxu0 %v673_v46 }
  0xe3   :  { %607 = vst [vmem:[#allocation2 + $0x8] sm:$0xff] %v575_v48   ;;  %v676_v49 = vpop.f32.mrb[4].mxu0 }
  0xe4   :  { %v171_v50 = vpop.f32.mrb[5].mxu0 }
  0xe5   :  { %v580_v51 = vpack.c.bf16 %v676_v49, %v171_v50  ;;  %730 = vmatprep.mubr.f32.mxu0 %v171_v50 }
  0xe6   :  { %731 = vmatmul.mubr.f32.gmra.mrb[20].mxu0 %v676_v49 }
  0xe7   :  { %608 = vst [vmem:[#allocation2 + $0x10] sm:$0xff] %v580_v51   ;;  %v679_v52 = vpop.f32.mrb[6].mxu0 }
  0xe8   :  { %v181_v53 = vpop.f32.mrb[7].mxu0 }
  0xe9   :  { %v585_v54 = vpack.c.bf16 %v679_v52, %v181_v53  ;;  %733 = vmatprep.mubr.f32.mxu1 %v181_v53 }
  0xea   :  { %734 = vmatmul.mubr.f32.vlgmr.msra.gmra.mrb[0].mxu1 %v679_v52 }
  0xeb   :  { %609 = vst [vmem:[#allocation2 + $0x18] sm:$0xff] %v585_v54   ;;  %v682_v55 = vpop.f32.mrb[8].mxu0 }
  0xec   :  { %v191_v56 = vpop.f32.mrb[9].mxu0 }
  0xed   :  { %v590_v57 = vpack.c.bf16 %v682_v55, %v191_v56  ;;  %736 = vmatprep.mubr.f32.mxu1 %v191_v56 }
  0xee   :  { %737 = vmatmul.mubr.f32.gmra.mrb[2].mxu1 %v682_v55 }
  0xef   :  { %610 = vst [vmem:[#allocation2 + $0x20] sm:$0xff] %v590_v57   ;;  %v685_v58 = vpop.f32.mrb[10].mxu0 }
  0xf0   :  { %v201_v59 = vpop.f32.mrb[11].mxu0 }
  0xf1   :  { %v595_v60 = vpack.c.bf16 %v685_v58, %v201_v59  ;;  %739 = vmatprep.mubr.f32.mxu1 %v201_v59 }
  0xf2   :  { %740 = vmatmul.mubr.f32.gmra.mrb[4].mxu1 %v685_v58 }
  0xf3   :  { %611 = vst [vmem:[#allocation2 + $0x28] sm:$0xff] %v595_v60   ;;  %v688_v61 = vpop.f32.mrb[12].mxu0 }
  0xf4   :  { %v211_v62 = vpop.f32.mrb[13].mxu0 }
  0xf5   :  { %v600_v63 = vpack.c.bf16 %v688_v61, %v211_v62  ;;  %742 = vmatprep.mubr.f32.mxu1 %v211_v62 }
  0xf6   :  { %743 = vmatmul.mubr.f32.gmra.mrb[6].mxu1 %v688_v61 }
  0xf7   :  { %612 = vst [vmem:[#allocation2 + $0x30] sm:$0xff] %v600_v63   ;;  %v691_v0 = vpop.f32.mrb[14].mxu0 }
  0xf8   :  { %v221_v1 = vpop.f32.mrb[15].mxu0 }
  0xf9   :  { %v605_v2 = vpack.c.bf16 %v691_v0, %v221_v1  ;;  %745 = vmatprep.mubr.f32.mxu1 %v221_v1 }
  0xfa   :  { %746 = vmatmul.mubr.f32.gmra.mrb[8].mxu1 %v691_v0 }
  0xfb   :  { %613 = vst [vmem:[#allocation2 + $0x38] sm:$0xff] %v605_v2  }
  0xfc   :  { %817 = shalt.err (!%p814_p4)
}
  0xfd   :  { %s818_s5 = scalar_lea.hbm %s1030_s3, 1024 }
  0xfe   :  { %p819_p5 = scmp.ne.s32.totalorder %s1030_s3, %s818_s5  ;;  %p822_p6 = scmp.lt.u32.totalorder %s818_s5, %s1030_s3 }
 0x100   :  { %p824_p7 = pnand %p822_p6, %p819_p5 }
 0x102   :  { %827 = shalt.err (!%p824_p7)
}
 0x103   :  { %s855_s10 = smov 64   ;;  %s856_s11 = smov 4  }
 0x104   :  { %498 = dma.vmem_to_hbm [thread:$0]  %s493_s2, 1024, %s1030_s3, [#allocation3], %s855_s10, %s855_s10, %s856_s11  }
 0x105   :  { %s857_s3 = smov [#allocation4]  }
 0x106   :  { %s504_s14 = sshll.u32 %s857_s3, 4  ;;  %s505_s14 = int_to_ptr.vmem [resolvable:$true] %s504_s14 }
 0x107   :  { %s828_s15 = scalar_lea.vmem %s505_s14, 2048  ;;  %p833_p9 = scmp.lt.s32.totalorder %s505_s14, %s505_s14 }
 0x108   :  { %p829_p8 = scmp.ne.s32.totalorder %s505_s14, %s828_s15  ;;  %p834_p10 = scmp.lt.s32.totalorder %s828_s15, %s828_s15 }
 0x10a   :  { %p835_p11 = por %p834_p10, %p833_p9 }
 0x10c   :  { %p836_p12 = pnand %p835_p11, %p829_p8 }
 0x1b1   :  { %v726_v3 = vpop.f32.mrb[16].mxu0 }
 0x1b2   :  { %472 = vst [vmem:[#allocation4 + $0x8] sm:$0xff] %v726_v3  ;;  %v392_v4 = vpop.f32.mrb[17].mxu0 }
 0x1b3   :  { %471 = vst [vmem:[#allocation4] sm:$0xff] %v392_v4 }
 0x1b5   :  { %v729_v5 = vpop.f32.mrb[18].mxu0 }
 0x1b6   :  { %474 = vst [vmem:[#allocation4 + $0x18] sm:$0xff] %v729_v5  ;;  %v402_v6 = vpop.f32.mrb[19].mxu0 }
 0x1b7   :  { %473 = vst [vmem:[#allocation4 + $0x10] sm:$0xff] %v402_v6 }
 0x1b9   :  { %v732_v7 = vpop.f32.mrb[20].mxu0 }
 0x1ba   :  { %476 = vst [vmem:[#allocation4 + $0x28] sm:$0xff] %v732_v7  ;;  %v412_v8 = vpop.f32.mrb[21].mxu0 }
 0x1bb   :  { %475 = vst [vmem:[#allocation4 + $0x20] sm:$0xff] %v412_v8 }
 0x1bd   :  { %v735_v9 = vpop.f32.mrb[0].mxu1 }
 0x1be   :  { %478 = vst [vmem:[#allocation4 + $0x38] sm:$0xff] %v735_v9  ;;  %v422_v10 = vpop.f32.mrb[1].mxu1 }
 0x1bf   :  { %477 = vst [vmem:[#allocation4 + $0x30] sm:$0xff] %v422_v10 }
 0x1c1   :  { %v738_v11 = vpop.f32.mrb[2].mxu1 }
 0x1c2   :  { %480 = vst [vmem:[#allocation4 + $0x48] sm:$0xff] %v738_v11  ;;  %v432_v12 = vpop.f32.mrb[3].mxu1 }
 0x1c3   :  { %479 = vst [vmem:[#allocation4 + $0x40] sm:$0xff] %v432_v12 }
 0x1c5   :  { %v741_v13 = vpop.f32.mrb[4].mxu1 }
 0x1c6   :  { %482 = vst [vmem:[#allocation4 + $0x58] sm:$0xff] %v741_v13  ;;  %v442_v14 = vpop.f32.mrb[5].mxu1 }
 0x1c7   :  { %481 = vst [vmem:[#allocation4 + $0x50] sm:$0xff] %v442_v14 }
 0x1c9   :  { %v744_v15 = vpop.f32.mrb[6].mxu1 }
 0x1ca   :  { %484 = vst [vmem:[#allocation4 + $0x68] sm:$0xff] %v744_v15  ;;  %v452_v16 = vpop.f32.mrb[7].mxu1 }
 0x1cb   :  { %483 = vst [vmem:[#allocation4 + $0x60] sm:$0xff] %v452_v16 }
 0x1cd   :  { %v747_v17 = vpop.f32.mrb[8].mxu1 }
 0x1ce   :  { %486 = vst [vmem:[#allocation4 + $0x78] sm:$0xff] %v747_v17  ;;  %v462_v18 = vpop.f32.mrb[9].mxu1 }
 0x1cf   :  { %485 = vst [vmem:[#allocation4 + $0x70] sm:$0xff] %v462_v18 }
 0x1d0   :  { %839 = shalt.err (!%p836_p12)
}
 0x1d1   :  { %s840_s18 = scalar_lea.hbm %s1031_s4, 2048 }
 0x1d2   :  { %p841_p13 = scmp.ne.s32.totalorder %s1031_s4, %s840_s18  ;;  %p844_p0 = scmp.lt.u32.totalorder %s840_s18, %s1031_s4 }
 0x1d4   :  { %p846_p1 = pnand %p844_p0, %p841_p13 }
 0x1d6   :  { %849 = shalt.err (!%p846_p1)
}
 0x1d7   :  { %s858_s23 = smov 128   ;;  %s859_s24 = smov 8  }
 0x1d8   :  { %510 = dma.vmem_to_hbm [thread:$0]  %s505_s14, 2048, %s1031_s4, [#allocation5], %s858_s23, %s858_s23, %s859_s24  }
 0x1d9   :  { %850 = dma.done.wait [#allocation3], 1024  }
 0x1da   :  { %851 = vsyncadd [#allocation3], 4294966272 }
 0x1db   :  { %852 = dma.done.wait [#allocation5], 2048  }
 0x1dc   :  { %853 = vsyncadd [#allocation5], 4294965248 }
 0x1dd   :  { %517 = vsyncpa [#allocation3], 1 }
 0x1de   :  { %518 = vsyncpa [#allocation5], 1 }

</bundles_post_ra>
